<compile_context>
chip_gen: v6e
topology: v6e:2x2x1
jax: 0.10.0
libtpu: 0.0.40
codegen_flags: <defaults>
</compile_context>

<pallas_src>
import functools
import math

import jax
import jax.numpy as jnp
from jax.experimental import pallas as pl
from jax.experimental.pallas import tpu as pltpu


def build_pe_table(d_model, max_len=500):
    """Same buffer as PositionalEncoding.__init__ (float32, shape (max_len, d_model))."""
    position = jnp.arange(max_len, dtype=jnp.float32)[:, None]              # (L, 1)
    div_term = jnp.exp(
        jnp.arange(0, d_model, 2, dtype=jnp.float32) * (-math.log(10000.0) / d_model)
    )                                                                        # (d_model//2,)
    ang = position * div_term                                                # (L, d_model//2)
    pe = jnp.zeros((max_len, d_model), dtype=jnp.float32)
    pe = pe.at[:, 0::2].set(jnp.sin(ang))
    pe = pe.at[:, 1::2].set(jnp.cos(ang))
    return pe


def _posenc_gather_kernel(idx_ref, pe_ref, o_ref, *, max_len):
    # idx_ref: (TB, 1) int32   pe_ref: (L_pad, TD) f32   o_ref: (TB, TD) f32
    idx = idx_ref[...]                                    # (TB, 1)
    # torch negative-index wrap semantics of self.pe[poses.long(), :]
    idx = jnp.where(idx < 0, idx + max_len, idx)
    tb = idx.shape[0]
    l_pad = pe_ref.shape[0]
    # One-hot along the lane dimension, then gather a whole block of rows
    # with a single MXU matmul.
    lane_iota = jax.lax.broadcasted_iota(jnp.int32, (tb, l_pad), 1)
    one_hot = (lane_iota == idx).astype(pe_ref.dtype)     # (TB, L_pad)
    o_ref[...] = jnp.dot(
        one_hot, pe_ref[...], preferred_element_type=jnp.float32
    ).astype(o_ref.dtype)


def positional_encoding_lookup(poses, pe, *, block_rows=512, block_cols=512):
    """Pallas equivalent of PositionalEncoding.forward: pe[poses.long(), :]."""
    orig_shape = poses.shape
    max_len, d_model = pe.shape

    # poses.long() -> integer indices (negative wrap handled inside the kernel).
    idx = poses.reshape(-1).astype(jnp.int32)
    n = idx.shape[0]

    # Block of indices per grid step: multiple of 8 sublanes, shrink for tiny inputs.
    n_r8 = ((n + 7) // 8) * 8
    tb = min(block_rows, n_r8)
    tb = ((tb + 7) // 8) * 8
    n_pad = ((n + tb - 1) // tb) * tb
    if n_pad != n:
        idx = jnp.pad(idx, (0, n_pad - n))                # padded rows gather row 0; sliced off
    idx2 = idx.reshape(n_pad, 1)

    # Pad the table rows to a multiple of 128 so the in-kernel one-hot is lane-dense.
    l_pad = ((max_len + 127) // 128) * 128
    pe_padded = jnp.pad(pe, ((0, l_pad - max_len), (0, 0))) if l_pad != max_len else pe

    # Tile d_model only when it is a large 128-aligned multiple of block_cols;
    # otherwise the block must equal the full dim (the (8,128) BlockSpec rule).
    if d_model > block_cols and d_model % block_cols == 0:
        td = block_cols
    else:
        td = d_model
    n_db = d_model // td
    n_rb = n_pad // tb
    # Row-block axis innermost so the pe column slab stays VMEM-resident across it.
    grid = (n_db, n_rb)

    cost = pl.CostEstimate(
        flops=2 * n_pad * l_pad * d_model,
        transcendentals=0,
        bytes_accessed=idx2.size * 4 * n_db + pe_padded.size * 4 + n_pad * d_model * 4,
    )

    kernel = functools.partial(_posenc_gather_kernel, max_len=max_len)

    out = pl.pallas_call(
        kernel,
        out_shape=jax.ShapeDtypeStruct((n_pad, d_model), pe.dtype),
        grid_spec=pltpu.PrefetchScalarGridSpec(
            num_scalar_prefetch=0,
            grid=grid,
            in_specs=[
                # One block of indices per row-block step.
                pl.BlockSpec((tb, 1), lambda j, i: (i, 0)),
                # pe column slab, resident across all row blocks (depends on j only).
                pl.BlockSpec((l_pad, td), lambda j, i: (0, j)),
            ],
            out_specs=pl.BlockSpec((tb, td), lambda j, i: (i, j)),
        ),
        compiler_params=pltpu.CompilerParams(
            dimension_semantics=("parallel", "parallel"),
        ),
        cost_estimate=cost,
    )(idx2, pe_padded)

    return out[:n].reshape(*orig_shape, d_model)


if __name__ == "__main__":
    key = jax.random.PRNGKey(0)
    d_model, max_len = 32, 500
    batch, seq = 2, 8

    pe = build_pe_table(d_model, max_len)
    poses = jax.random.randint(key, (batch, seq), 0, max_len, dtype=jnp.int32)

    y = positional_encoding_lookup(poses, pe)
    y = jax.block_until_ready(y)

    # Reference: plain JAX gather (semantics of torch's self.pe[poses.long(), :]).
    ref = pe[poses, :]
    assert y.shape == (batch, seq, d_model)
    assert y.dtype == jnp.float32
    assert jnp.allclose(y, ref)

    print("KERNEL_OK")
</pallas_src>

<mosaic_0001>
module attributes {stable_mosaic.version = 11 : i64} {
  func.func @_posenc_gather_kernel(%arg0: i32, %arg1: i32, %arg2: memref<16x1xi32, #tpu.memory_space<vmem>>, %arg3: memref<512x32xf32, #tpu.memory_space<vmem>>, %arg4: memref<16x32xf32, #tpu.memory_space<vmem>>) attributes {dimension_semantics = [#tpu.dimension_semantics<parallel>, #tpu.dimension_semantics<parallel>], iteration_bounds = array<i64: 1, 1>, scalar_prefetch = 0 : i64, scratch_operands = 0 : i64, tpu.core_type = #tpu.core_type<tc>, window_params = [{transform_indices = @transform_0, window_bounds = array<i64: 16, 1>}, {transform_indices = @transform_1, window_bounds = array<i64: 512, 32>}, {transform_indices = @transform_2, window_bounds = array<i64: 16, 32>}]} {
    %c0 = arith.constant 0 : index
    %c0_0 = arith.constant 0 : index
    %0 = vector.load %arg2[%c0, %c0_0] : memref<16x1xi32, #tpu.memory_space<vmem>>, vector<16x1xi32>
    %c0_i32 = arith.constant 0 : i32
    %1 = vector.broadcast %c0_i32 : i32 to vector<16x1xi32>
    %2 = arith.cmpi slt, %0, %1 : vector<16x1xi32>
    %c500_i32 = arith.constant 500 : i32
    %3 = vector.broadcast %c500_i32 : i32 to vector<16x1xi32>
    %4 = arith.addi %0, %3 : vector<16x1xi32>
    %5 = arith.select %2, %4, %0 : vector<16x1xi1>, vector<16x1xi32>
    %6 = tpu.iota {dimensions = array<i32: 1>} : vector<16x512xi32>
    %7 = vector.broadcast %5 : vector<16x1xi32> to vector<16x512xi32>
    %8 = arith.cmpi eq, %6, %7 : vector<16x512xi32>
    %9 = arith.extui %8 : vector<16x512xi1> to vector<16x512xi32>
    %10 = arith.sitofp %9 : vector<16x512xi32> to vector<16x512xf32>
    %c0_1 = arith.constant 0 : index
    %c0_2 = arith.constant 0 : index
    %11 = vector.load %arg3[%c0_1, %c0_2] : memref<512x32xf32, #tpu.memory_space<vmem>>, vector<512x32xf32>
    %cst = arith.constant dense<0.000000e+00> : vector<16x32xf32>
    %12 = tpu.matmul %10, %11, %cst {dimension_numbers = #tpu.dot_dimension_numbers<[1], [0], [0], [1], [0, 0, 1, 1], [], []>} : vector<16x512xf32>, vector<512x32xf32>, vector<16x32xf32> -> vector<16x32xf32>
    %c0_3 = arith.constant 0 : index
    %c0_4 = arith.constant 0 : index
    %13 = vector.load %arg4[%c0_3, %c0_4] : memref<16x32xf32, #tpu.memory_space<vmem>>, vector<16x32xf32>
    tpu.vector_store %arg4[%c0_3, %c0_4], %12 {strides = array<i32>} : memref<16x32xf32, #tpu.memory_space<vmem>>, vector<16x32xf32>,
    return
  }
  func.func @transform_0(%arg0: i32, %arg1: i32) -> (i32, i32) {
    %c0_i32 = arith.constant 0 : i32
    %c0_i32_0 = arith.constant 0 : i32
    return %arg1, %c0_i32 : i32, i32
  }
  func.func @transform_1(%arg0: i32, %arg1: i32) -> (i32, i32) {
    %c0_i32 = arith.constant 0 : i32
    %c0_i32_0 = arith.constant 0 : i32
    return %c0_i32, %arg0 : i32, i32
  }
  func.func @transform_2(%arg0: i32, %arg1: i32) -> (i32, i32) {
    %c0_i32 = arith.constant 0 : i32
    return %arg1, %arg0 : i32, i32
  }
}

</mosaic_0001>

<bundles_post_ra>
// kernel: tpu_custom_call.1
= control target key start
LH: loop header
LB: loop body
LE: loop exit
PB: predicated region body
PF: predicated region fallthrough
CT: control target
= control target key end

     0   :  { %v408_v3 = vmov 0   ;;  %s630_s0 = inlined_call_operand.vmem [shape: s32[16,1], index: 0, kind: input, shape index: {}]   ;;  %s631_s1 = inlined_call_operand.vmem [shape: f32[512,32], index: 1, kind: input, shape index: {}]   ;;  %s632_s2 = inlined_call_operand.hbm [shape: f32[16,32], index: 2, kind: output, shape index: {}]  }
   0x1   :  { %v12_v0 = vld [vmem:[%s630_s0] sm:$0xff]  ;;  %v13_v1 = vld [vmem:[%s630_s0 + $0x8] sm:$0xff]  ;;  %v86_v2 = vld [vmem:[%s631_s1 + $0xf8] sm:$0xff]  ;;  %385 = vset.pattern.permute.xlu0 %v408_v3 }
   0x2   :  { %vm14_vm0 = vcmp.lt.s32.totalorder %v12_v0, 0  ;;  %v16_v4 = vadd.s32 500, %v12_v0  ;;  %v17_v5 = vadd.s32 500, %v13_v1  ;;  %304 = vmatprep.subr.mxu0 %v86_v2  ;;  %v118_v6 = vld [vmem:[%s631_s1 + $0x1f8] sm:$0xff]  ;;  %vm15_vm1 = vcmp.lt.s32.totalorder %v13_v1, 0  ;;  %v85_v9 = vld [vmem:[%s631_s1 + $0xf0] sm:$0xff] }
   0x3   :  { %v70_v7 = vld [vmem:[%s631_s1 + $0x78] sm:$0xff]  ;;  %342 = vmatprep.subr.mxu1 %v118_v6  ;;  %v117_v10 = vld [vmem:[%s631_s1 + $0x1f0] sm:$0xff]  ;;  %v84_v14 = vld [vmem:[%s631_s1 + $0xe8] sm:$0xff] }
   0x4   :  { %305 = vmatpush3.msra.mxu0 %v70_v7  ;;  %v102_v8 = vld [vmem:[%s631_s1 + $0x178] sm:$0xff]  ;;  %v18_v11 = vsel %vm14_vm0, %v16_v4, %v12_v0  ;;  %v69_v12 = vld [vmem:[%s631_s1 + $0x70] sm:$0xff]  ;;  %v116_v15 = vld [vmem:[%s631_s1 + $0x1e8] sm:$0xff]  ;;  %v19_v18 = vsel %vm15_vm1, %v17_v5, %v13_v1 }
   0x5   :  { %343 = vmatpush3.msra.mxu1 %v102_v8  ;;  %306 = vmatprep.subr.mxu0 %v85_v9  ;;  %v101_v13 = vld [vmem:[%s631_s1 + $0x170] sm:$0xff]  ;;  %v68_v16 = vld [vmem:[%s631_s1 + $0x68] sm:$0xff]  ;;  %v83_v19 = vld [vmem:[%s631_s1 + $0xe0] sm:$0xff] }
   0x6   :  { %26 = vperm.xlu0 %385, %v18_v11   ;;  %344 = vmatprep.subr.mxu1 %v117_v10  ;;  %v100_v17 = vld [vmem:[%s631_s1 + $0x168] sm:$0xff]  ;;  %v115_v20 = vld [vmem:[%s631_s1 + $0x1e0] sm:$0xff]  ;;  %v82_v23 = vld [vmem:[%s631_s1 + $0xd8] sm:$0xff] }
   0x7   :  { %307 = vmatpush3.msra.mxu0 %v69_v12  ;;  %345 = vmatpush3.msra.mxu1 %v101_v13  ;;  %v67_v21 = vld [vmem:[%s631_s1 + $0x60] sm:$0xff]  ;;  %v114_v24 = vld [vmem:[%s631_s1 + $0x1d8] sm:$0xff]  ;;  %v81_v27 = vld [vmem:[%s631_s1 + $0xd0] sm:$0xff] }
   0x8   :  { %308 = vmatprep.subr.mxu0 %v84_v14  ;;  %346 = vmatprep.subr.mxu1 %v116_v15  ;;  %v99_v22 = vld [vmem:[%s631_s1 + $0x160] sm:$0xff]  ;;  %v66_v25 = vld [vmem:[%s631_s1 + $0x58] sm:$0xff]  ;;  %v113_v28 = vld [vmem:[%s631_s1 + $0x1d0] sm:$0xff] }
   0x9   :  { %309 = vmatpush3.msra.mxu0 %v68_v16  ;;  %347 = vmatpush3.msra.mxu1 %v100_v17  ;;  %v98_v26 = vld [vmem:[%s631_s1 + $0x158] sm:$0xff]  ;;  %v65_v29 = vld [vmem:[%s631_s1 + $0x50] sm:$0xff]  ;;  %v80_v31 = vld [vmem:[%s631_s1 + $0xc8] sm:$0xff] }
   0xa   :  { %29 = vperm.xlu0 %385, %v19_v18   ;;  %310 = vmatprep.subr.mxu0 %v83_v19  ;;  %v97_v30 = vld [vmem:[%s631_s1 + $0x150] sm:$0xff]  ;;  %v112_v32 = vld [vmem:[%s631_s1 + $0x1c8] sm:$0xff]  ;;  %v79_v35 = vld [vmem:[%s631_s1 + $0xc0] sm:$0xff] }
   0xb   :  { %348 = vmatprep.subr.mxu1 %v115_v20  ;;  %311 = vmatpush3.msra.mxu0 %v67_v21  ;;  %v64_v33 = vld [vmem:[%s631_s1 + $0x48] sm:$0xff]  ;;  %v111_v36 = vld [vmem:[%s631_s1 + $0x1c0] sm:$0xff]  ;;  %v78_v39 = vld [vmem:[%s631_s1 + $0xb8] sm:$0xff] }
   0xc   :  { %349 = vmatpush3.msra.mxu1 %v99_v22  ;;  %312 = vmatprep.subr.mxu0 %v82_v23  ;;  %v96_v34 = vld [vmem:[%s631_s1 + $0x148] sm:$0xff]  ;;  %v63_v37 = vld [vmem:[%s631_s1 + $0x40] sm:$0xff]  ;;  %v110_v40 = vld [vmem:[%s631_s1 + $0x1b8] sm:$0xff] }
   0xd   :  { %350 = vmatprep.subr.mxu1 %v114_v24  ;;  %313 = vmatpush3.msra.mxu0 %v66_v25  ;;  %v95_v38 = vld [vmem:[%s631_s1 + $0x140] sm:$0xff]  ;;  %v62_v41 = vld [vmem:[%s631_s1 + $0x38] sm:$0xff]  ;;  %v77_v43 = vld [vmem:[%s631_s1 + $0xb0] sm:$0xff] }
   0xe   :  { %351 = vmatpush3.msra.mxu1 %v98_v26  ;;  %314 = vmatprep.subr.mxu0 %v81_v27  ;;  %v94_v42 = vld [vmem:[%s631_s1 + $0x138] sm:$0xff]  ;;  %v109_v44 = vld [vmem:[%s631_s1 + $0x1b0] sm:$0xff]  ;;  %v76_v47 = vld [vmem:[%s631_s1 + $0xa8] sm:$0xff] }
   0xf   :  { %352 = vmatprep.subr.mxu1 %v113_v28  ;;  %315 = vmatpush3.msra.mxu0 %v65_v29  ;;  %v61_v45 = vld [vmem:[%s631_s1 + $0x30] sm:$0xff]  ;;  %v108_v48 = vld [vmem:[%s631_s1 + $0x1a8] sm:$0xff]  ;;  %v75_v51 = vld [vmem:[%s631_s1 + $0xa0] sm:$0xff] }
  0x10   :  { %353 = vmatpush3.msra.mxu1 %v97_v30  ;;  %316 = vmatprep.subr.mxu0 %v80_v31  ;;  %v93_v46 = vld [vmem:[%s631_s1 + $0x130] sm:$0xff]  ;;  %v60_v49 = vld [vmem:[%s631_s1 + $0x28] sm:$0xff]  ;;  %v107_v52 = vld [vmem:[%s631_s1 + $0x1a0] sm:$0xff] }
  0x11   :  { %354 = vmatprep.subr.mxu1 %v112_v32  ;;  %317 = vmatpush3.msra.mxu0 %v64_v33  ;;  %v92_v50 = vld [vmem:[%s631_s1 + $0x128] sm:$0xff]  ;;  %v59_v53 = vld [vmem:[%s631_s1 + $0x20] sm:$0xff] }
  0x12   :  { %355 = vmatpush3.msra.mxu1 %v96_v34  ;;  %318 = vmatprep.subr.mxu0 %v79_v35 }
  0x13   :  { %356 = vmatprep.subr.mxu1 %v111_v36  ;;  %319 = vmatpush3.msra.mxu0 %v63_v37 }
  0x14   :  { %357 = vmatpush3.msra.mxu1 %v95_v38  ;;  %320 = vmatprep.subr.mxu0 %v78_v39 }
  0x15   :  { %358 = vmatprep.subr.mxu1 %v110_v40  ;;  %321 = vmatpush3.msra.mxu0 %v62_v41 }
  0x16   :  { %359 = vmatpush3.msra.mxu1 %v94_v42  ;;  %322 = vmatprep.subr.mxu0 %v77_v43 }
  0x17   :  { %360 = vmatprep.subr.mxu1 %v109_v44  ;;  %323 = vmatpush3.msra.mxu0 %v61_v45 }
  0x18   :  { %361 = vmatpush3.msra.mxu1 %v93_v46  ;;  %324 = vmatprep.subr.mxu0 %v76_v47 }
  0x19   :  { %7 = vsyncpa [#allocation3], 0  ;;  %362 = vmatprep.subr.mxu1 %v108_v48  ;;  %325 = vmatpush3.msra.mxu0 %v60_v49  ;;  %v91_v54 = vld [vmem:[%s631_s1 + $0x120] sm:$0xff]  ;;  %v74_v55 = vld [vmem:[%s631_s1 + $0x98] sm:$0xff]  ;;  %v20_v7 = vlaneseq  ;;  %v409_v13 = vmov 1.0   ;;  %vm269_vm10 = vcmask 261120  }
  0x1a   :  { %363 = vmatpush3.msra.mxu1 %v92_v50  ;;  %326 = vmatprep.subr.mxu0 %v75_v51  ;;  %v106_v56 = vld [vmem:[%s631_s1 + $0x198] sm:$0xff]  ;;  %v73_v59 = vld [vmem:[%s631_s1 + $0x90] sm:$0xff]  ;;  %v72_v63 = vld [vmem:[%s631_s1 + $0x88] sm:$0xff] }
  0x1b   :  { %v58_v57 = vld [vmem:[%s631_s1 + $0x18] sm:$0xff]  ;;  %364 = vmatprep.subr.mxu1 %v107_v52  ;;  %327 = vmatpush3.msra.mxu0 %v59_v53  ;;  %v105_v60 = vld [vmem:[%s631_s1 + $0x190] sm:$0xff]  ;;  %v104_v0 = vld [vmem:[%s631_s1 + $0x188] sm:$0xff]  ;;  %v21_v8 = vand.u32 127, %v20_v7 }
  0x1c   :  { %v90_v58 = vld [vmem:[%s631_s1 + $0x118] sm:$0xff]  ;;  %365 = vmatpush3.msra.mxu1 %v91_v54  ;;  %328 = vmatprep.subr.mxu0 %v74_v55  ;;  %v57_v61 = vld [vmem:[%s631_s1 + $0x10] sm:$0xff]  ;;  %v56_v1 = vld [vmem:[%s631_s1 + $0x8] sm:$0xff] }
  0x1d   :  { %366 = vmatprep.subr.mxu1 %v106_v56  ;;  %329 = vmatpush3.msra.mxu0 %v58_v57  ;;  %v89_v62 = vld [vmem:[%s631_s1 + $0x110] sm:$0xff]  ;;  %v88_v2 = vld [vmem:[%s631_s1 + $0x108] sm:$0xff]  ;;  %v71_v3 = vld [vmem:[%s631_s1 + $0x80] sm:$0xff]  ;;  %v22_v9 = vadd.s32 128, %v21_v8  ;;  %v24_v10 = vadd.s32 384, %v21_v8  ;;  %v23_v11 = vadd.s32 256, %v21_v8 }
  0x1e   :  { %367 = vmatpush3.msra.mxu1 %v90_v58  ;;  %330 = vmatprep.subr.mxu0 %v73_v59  ;;  %v103_v4 = vld [vmem:[%s631_s1 + $0x180] sm:$0xff] }
  0x1f   :  { %368 = vmatprep.subr.mxu1 %v105_v60  ;;  %331 = vmatpush3.msra.mxu0 %v57_v61  ;;  %v55_v5 = vld [vmem:[%s631_s1] sm:$0xff] }
  0x20   :  { %369 = vmatpush3.msra.mxu1 %v89_v62  ;;  %332 = vmatprep.subr.mxu0 %v72_v63  ;;  %v87_v6 = vld [vmem:[%s631_s1 + $0x100] sm:$0xff]  ;;  %s410_s1 = smov [#allocation2]  }
  0x21   :  { %370 = vmatprep.subr.mxu1 %v104_v0  ;;  %333 = vmatpush3.msra.mxu0 %v56_v1  ;;  %s277_s24 = sshll.u32 %s410_s1, 4  ;;  %s278_s24 = int_to_ptr.vmem [resolvable:$true] %s277_s24 }
  0x22   :  { %371 = vmatpush3.msra.mxu1 %v88_v2  ;;  %334 = vmatprep.subr.mxu0 %v71_v3  ;;  %s386_s25 = scalar_lea.vmem %s278_s24, 256  ;;  %p391_p1 = scmp.lt.s32.totalorder %s278_s24, %s278_s24 }
  0x23   :  { %372 = vmatprep.subr.mxu1 %v103_v4  ;;  %335 = vmatpush3.msra.mxu0 %v55_v5  ;;  %p387_p0 = scmp.ne.s32.totalorder %s278_s24, %s386_s25  ;;  %p392_p2 = scmp.lt.s32.totalorder %s386_s25, %s386_s25 }
  0x24   :  { %373 = vmatpush3.msra.mxu1 %v87_v6 }
  0x25   :  { %p393_p3 = por %p392_p2, %p391_p1 }
  0x27   :  { %p394_p4 = pnand %p393_p3, %p387_p0 }
  0x81   :  { %v27_v12 = vpop.permute.xlu0 %26 }
  0x82   :  { %vm32_vm2 = vcmp.eq.s32.totalorder %v22_v9, %v27_v12  ;;  %vm34_vm3 = vcmp.eq.s32.totalorder %v24_v10, %v27_v12  ;;  %vm31_vm4 = vcmp.eq.s32.totalorder %v21_v8, %v27_v12  ;;  %vm33_vm5 = vcmp.eq.s32.totalorder %v23_v11, %v27_v12 }
  0x83   :  { %296 = vmatprep.mubr.msk.f32.mxu0 %vm32_vm2, %v409_v13  ;;  %300 = vmatprep.mubr.msk.f32.mxu1 %vm34_vm3, %v409_v13 }
  0x84   :  { %297 = vmatmul.mubr.msk.f32.vlgmr.msra.gmra.mxu0 %vm31_vm4, %v409_v13  ;;  %301 = vmatmul.mubr.msk.f32.vlgmr.msra.gmra.mxu1 %vm33_vm5, %v409_v13 }
  0x85   :  { %v30_v14 = vpop.permute.xlu0 %29 }
  0x86   :  { %vm36_vm6 = vcmp.eq.s32.totalorder %v22_v9, %v30_v14  ;;  %vm38_vm7 = vcmp.eq.s32.totalorder %v24_v10, %v30_v14  ;;  %vm35_vm8 = vcmp.eq.s32.totalorder %v21_v8, %v30_v14  ;;  %vm37_vm9 = vcmp.eq.s32.totalorder %v23_v11, %v30_v14 }
  0x87   :  { %298 = vmatprep.mubr.msk.f32.mxu0 %vm36_vm6, %v409_v13  ;;  %302 = vmatprep.mubr.msk.f32.mxu1 %vm38_vm7, %v409_v13 }
  0x88   :  { %299 = vmatmul.mubr.msk.f32.gmra.mxu0 %vm35_vm8, %v409_v13  ;;  %303 = vmatmul.mubr.msk.f32.gmra.mxu1 %vm37_vm9, %v409_v13 }
 0x144   :  { %v336_v15 = vpop.f32.mrf.mxu0  ;;  %v374_v16 = vpop.f32.mrf.mxu1 }
 0x146   :  { %v337_v17 = vpop.f32.mrf.mxu0  ;;  %v375_v18 = vpop.f32.mrf.mxu1 }
 0x147   :  { %v338_v19 = vadd.f32 %v337_v17, %v336_v15  ;;  %v376_v20 = vadd.f32 %v375_v18, %v374_v16 }
 0x148   :  { %v339_v21 = vpop.f32.mrf.mxu0  ;;  %v377_v22 = vpop.f32.mrf.mxu1 }
 0x149   :  { %v261_v23 = vadd.f32 %v376_v20, %v338_v19 }
 0x14a   :  { %v340_v24 = vpop.f32.mrf.mxu0  ;;  %v378_v25 = vpop.f32.mrf.mxu1 }
 0x14b   :  { %270 = vst.msk [vmem:[#allocation2] sm:$0xff] %vm269_vm10, %v261_v23  ;;  %v341_v26 = vadd.f32 %v340_v24, %v339_v21  ;;  %v379_v27 = vadd.f32 %v378_v25, %v377_v22 }
 0x14d   :  { %v266_v28 = vadd.f32 %v379_v27, %v341_v26 }
 0x14f   :  { %271 = vst.msk [vmem:[#allocation2 + $0x8] sm:$0xff] %vm269_vm10, %v266_v28 }
 0x150   :  { %397 = shalt.err (!%p394_p4)
}
 0x151   :  { %s411_s26 = smov 128   ;;  %s412_s27 = smov 8  }
 0x152   :  { %283 = dma.vmem_to_hbm [thread:$0]  %s278_s24, 256, %s632_s2, [#allocation3], %s411_s26, %s411_s26, %s412_s27  }
 0x153   :  { %406 = dma.done.wait [#allocation3], 256  }
 0x154   :  { %407 = vsyncadd [#allocation3], 4294967040 }
 0x155   :  { %287 = vsyncpa [#allocation3], 1 }

</bundles_post_ra>
